<compile_context>
chip_gen: v6e
topology: v6e:2x2x1
jax: 0.10.0
libtpu: 0.0.40
codegen_flags: <defaults>
</compile_context>

<pallas_src>
import jax
import jax.numpy as jnp
import numpy as np
from jax.experimental import pallas as pl
from jax.experimental.pallas import tpu as pltpu


def _prelu(x, alpha):
    return jnp.where(x >= 0, x, alpha * x)


def _resblock_kernel(x_ref, w1_ref, b1_ref, a1_ref,
                     w2_ref, b2_ref, a2_ref,
                     se1_ref, ar1_ref, se2_ref, arout_ref,
                     o_ref):
    x = x_ref[...].astype(jnp.float32)               # (N, H, W*C) lane-dense rows
    N, H, WC = x.shape

    def conv_rows(x3, wbig, brow, arow):
        # 3x3 replicate-padded conv as one (N*H, 3*WC) @ (3*WC, WC) matmul.
        # Vertical taps: edge-clamped row shifts (per batch element, along sublanes).
        xu = jnp.concatenate([x3[:, :1], x3[:, :-1]], axis=1)    # row h-1, clamped
        xd = jnp.concatenate([x3[:, 1:], x3[:, -1:]], axis=1)    # row h+1, clamped
        lhs = jnp.concatenate([xu, x3, xd], axis=-1).reshape(N * H, 3 * WC)
        out = jnp.dot(lhs, wbig, preferred_element_type=jnp.float32) + brow
        return _prelu(out, arow)                                  # (N*H, WC)

    # conv0 is nn.Identity() for in_planes == out_planes and stride == 1; residual = x.
    # TODO(synk): strided / channel-changing conv0 branch (3x3 zero-pad conv) not implemented.
    h = conv_rows(x, w1_ref[...], b1_ref[...], a1_ref[...]).reshape(N, H, WC)   # conv1 + PReLU
    h = conv_rows(h, w2_ref[...], b2_ref[...], a2_ref[...]).reshape(N, H, WC)   # conv2 + PReLU

    # Squeeze-excite: global average pool + fc1 folded into se1 = pool @ fc1 (WC, 16);
    # fc2 + channel->lane expansion folded into se2 = fc2 @ expand (16, WC).
    hsum = jnp.sum(h, axis=1)                                                    # (N, WC)
    z = jnp.dot(hsum, se1_ref[...], preferred_element_type=jnp.float32)          # (N, 16)
    z = _prelu(z, ar1_ref[...])                                                  # relu1 = PReLU(1)
    g = jax.nn.sigmoid(jnp.dot(z, se2_ref[...],
                               preferred_element_type=jnp.float32))              # (N, WC)

    out = _prelu(h * g[:, None, :] + x, arout_ref[...])                          # relu2 = PReLU(C)
    o_ref[...] = out.astype(o_ref.dtype)


def _row_conv_weight(w_hwio, W):
    # (3, 3, Cin, Cout) HWIO conv weight -> (3*W*Cin, W*Cout) matrix so that
    #   out_row[h] = concat(x_row[clamp(h-1)], x_row[h], x_row[clamp(h+1)]) @ weight
    # reproduces the 3x3 conv with replicate padding along W (rows are w-major, c-minor).
    _, _, Cin, Cout = w_hwio.shape
    wo = np.arange(W)
    S = np.zeros((3, W, W), np.float32)               # S[dw, w_in, w_out]
    for dw in range(3):
        wi = np.clip(wo + dw - 1, 0, W - 1)           # replicate padding along W
        S[dw, wi, wo] = 1.0
    S = jnp.asarray(S)
    blocks = []
    for dh in range(3):
        blk = jnp.einsum('dab,dio->aibo', S, w_hwio[dh])          # (W, Cin, W, Cout)
        blocks.append(blk.reshape(W * Cin, W * Cout))
    return jnp.concatenate(blocks, axis=0)                         # (3*W*Cin, W*Cout)


def resblock_pallas(x_nhwc, params):
    N, H, W, C = x_nhwc.shape
    WC = W * C
    assert WC == 128, "kernel is specialized for W*C == 128 (lane-dense layout)"

    # --- assemble lane-dense operands at trace time (wrapper, not in-kernel) ---
    w1big = _row_conv_weight(params['w1'], W)                      # (384, 128)
    w2big = _row_conv_weight(params['w2'], W)                      # (384, 128)
    b1row = jnp.tile(params['b1'].reshape(-1), W).reshape(1, WC)
    a1row = jnp.tile(params['a1'].reshape(-1), W).reshape(1, WC)
    b2row = jnp.tile(params['b2'].reshape(-1), W).reshape(1, WC)
    a2row = jnp.tile(params['a2'].reshape(-1), W).reshape(1, WC)
    arout = jnp.tile(params['ar2'].reshape(-1), W).reshape(1, WC)
    pool = jnp.asarray(np.tile(np.eye(C, dtype=np.float32), (W, 1)) / (H * W))   # (WC, C)
    expand = jnp.asarray(np.tile(np.eye(C, dtype=np.float32), (1, W)))           # (C, WC)
    se1 = jnp.dot(pool, params['fc1'])                              # (WC, 16)
    se2 = jnp.dot(params['fc2'], expand)                            # (16, WC)
    ar1 = params['ar1'].reshape(1, 1)

    x_rows = x_nhwc.reshape(N, H, WC)                               # lane-dense rows

    pargs = [w1big, b1row, a1row, w2big, b2row, a2row, se1, ar1, se2, arout]

    def full_spec(a):
        nd = a.ndim
        return pl.BlockSpec(a.shape, lambda i, _nd=nd: (0,) * _nd)

    in_specs = [full_spec(x_rows)] + [full_spec(a) for a in pargs]
    out_spec = pl.BlockSpec((N, H, WC), lambda i: (0, 0, 0))

    out = pl.pallas_call(
        _resblock_kernel,
        out_shape=jax.ShapeDtypeStruct((N, H, WC), x_nhwc.dtype),
        grid_spec=pltpu.PrefetchScalarGridSpec(
            num_scalar_prefetch=0,
            grid=(1,),                                  # whole batch in one step (tiny problem)
            in_specs=in_specs,
            out_specs=out_spec,
        ),
        compiler_params=pltpu.CompilerParams(
            dimension_semantics=("arbitrary",)),
    )(x_rows, *pargs)

    return out.reshape(N, H, W, C)


def resblock_ref(x, p):
    # Pure-JAX reference, NHWC.
    def conv3(xx, w, b):
        xp = jnp.pad(xx, ((0, 0), (1, 1), (1, 1), (0, 0)), mode='edge')
        yy = jax.lax.conv_general_dilated(
            xp, w, window_strides=(1, 1), padding='VALID',
            dimension_numbers=('NHWC', 'HWIO', 'NHWC'))
        return yy + b.reshape(1, 1, 1, -1)

    def prelu(xx, a):
        return jnp.where(xx >= 0, xx, a * xx)

    y = x
    h = prelu(conv3(x, p['w1'], p['b1']), p['a1'].reshape(1, 1, 1, -1))
    h = prelu(conv3(h, p['w2'], p['b2']), p['a2'].reshape(1, 1, 1, -1))
    w = jnp.mean(h, axis=(1, 2), keepdims=True)                       # (N,1,1,C)
    w = jnp.einsum('nijc,co->nijo', w, p['fc1'])
    w = prelu(w, p['ar1'].reshape(1, 1, 1, 1))
    w = jnp.einsum('nijc,co->nijo', w, p['fc2'])
    w = jax.nn.sigmoid(w)
    return prelu(h * w + y, p['ar2'].reshape(1, 1, 1, -1))


if __name__ == "__main__":
    key = jax.random.PRNGKey(0)
    N, C, H, W = 2, 8, 16, 16          # in_planes = out_planes = 8, stride = 1; W*C = 128
    ks = jax.random.split(key, 8)

    # PyTorch-style NCHW input
    x_nchw = jax.random.normal(ks[0], (N, C, H, W), jnp.float32)

    # Deterministic synthetic parameters (PReLU alphas at PyTorch default 0.25)
    params = {
        'w1':  0.1 * jax.random.normal(ks[1], (3, 3, C, C), jnp.float32),   # conv1 weight (HWIO)
        'b1':  0.05 * jax.random.normal(ks[2], (1, C), jnp.float32),        # conv1 bias
        'a1':  jnp.full((1, C), 0.25, jnp.float32),                         # conv1 PReLU
        'w2':  0.1 * jax.random.normal(ks[3], (3, 3, C, C), jnp.float32),   # conv2 weight
        'b2':  0.05 * jax.random.normal(ks[4], (1, C), jnp.float32),        # conv2 bias
        'a2':  jnp.full((1, C), 0.25, jnp.float32),                         # conv2 PReLU
        'fc1': 0.1 * jax.random.normal(ks[5], (C, 16), jnp.float32),        # fc1 1x1 conv (C->16)
        'fc2': 0.1 * jax.random.normal(ks[6], (16, C), jnp.float32),        # fc2 1x1 conv (16->C)
        'ar1': jnp.full((1, 1), 0.25, jnp.float32),                         # relu1 = PReLU(1)
        'ar2': jnp.full((1, C), 0.25, jnp.float32),                         # relu2 = PReLU(C)
    }

    x_nhwc = jnp.transpose(x_nchw, (0, 2, 3, 1))
    out = resblock_pallas(x_nhwc, params)
    out = jax.block_until_ready(out)

    ref = resblock_ref(x_nhwc, params)
    np.testing.assert_allclose(np.asarray(out), np.asarray(ref), rtol=1e-4, atol=1e-4)

    out_nchw = jnp.transpose(out, (0, 3, 1, 2))   # back to PyTorch NCHW convention
    jax.block_until_ready(out_nchw)
    print("KERNEL_OK")
</pallas_src>

<mosaic_0001>
module attributes {stable_mosaic.version = 11 : i64} {
  func.func @_resblock_kernel(%arg0: i32, %arg1: memref<2x16x128xf32, #tpu.memory_space<vmem>>, %arg2: memref<384x128xf32, #tpu.memory_space<vmem>>, %arg3: memref<1x128xf32, #tpu.memory_space<vmem>>, %arg4: memref<1x128xf32, #tpu.memory_space<vmem>>, %arg5: memref<384x128xf32, #tpu.memory_space<vmem>>, %arg6: memref<1x128xf32, #tpu.memory_space<vmem>>, %arg7: memref<1x128xf32, #tpu.memory_space<vmem>>, %arg8: memref<128x16xf32, #tpu.memory_space<vmem>>, %arg9: memref<1x1xf32, #tpu.memory_space<vmem>>, %arg10: memref<16x128xf32, #tpu.memory_space<vmem>>, %arg11: memref<1x128xf32, #tpu.memory_space<vmem>>, %arg12: memref<2x16x128xf32, #tpu.memory_space<vmem>>) attributes {dimension_semantics = [#tpu.dimension_semantics<arbitrary>], iteration_bounds = array<i64: 1>, scalar_prefetch = 0 : i64, scratch_operands = 0 : i64, tpu.core_type = #tpu.core_type<tc>, window_params = [{pipeline_mode = #tpu.pipeline_mode<synchronous>, transform_indices = @transform_0, window_bounds = array<i64: 2, 16, 128>}, {pipeline_mode = #tpu.pipeline_mode<synchronous>, transform_indices = @transform_1, window_bounds = array<i64: 384, 128>}, {pipeline_mode = #tpu.pipeline_mode<synchronous>, transform_indices = @transform_2, window_bounds = array<i64: 1, 128>}, {pipeline_mode = #tpu.pipeline_mode<synchronous>, transform_indices = @transform_3, window_bounds = array<i64: 1, 128>}, {pipeline_mode = #tpu.pipeline_mode<synchronous>, transform_indices = @transform_4, window_bounds = array<i64: 384, 128>}, {pipeline_mode = #tpu.pipeline_mode<synchronous>, transform_indices = @transform_5, window_bounds = array<i64: 1, 128>}, {pipeline_mode = #tpu.pipeline_mode<synchronous>, transform_indices = @transform_6, window_bounds = array<i64: 1, 128>}, {pipeline_mode = #tpu.pipeline_mode<synchronous>, transform_indices = @transform_7, window_bounds = array<i64: 128, 16>}, {pipeline_mode = #tpu.pipeline_mode<synchronous>, transform_indices = @transform_8, window_bounds = array<i64: 1, 1>}, {pipeline_mode = #tpu.pipeline_mode<synchronous>, transform_indices = @transform_9, window_bounds = array<i64: 16, 128>}, {pipeline_mode = #tpu.pipeline_mode<synchronous>, transform_indices = @transform_10, window_bounds = array<i64: 1, 128>}, {pipeline_mode = #tpu.pipeline_mode<synchronous>, transform_indices = @transform_11, window_bounds = array<i64: 2, 16, 128>}]} {
    %c0 = arith.constant 0 : index
    %c0_0 = arith.constant 0 : index
    %c0_1 = arith.constant 0 : index
    %0 = vector.load %arg1[%c0, %c0_0, %c0_1] : memref<2x16x128xf32, #tpu.memory_space<vmem>>, vector<2x16x128xf32>
    %c0_2 = arith.constant 0 : index
    %c0_3 = arith.constant 0 : index
    %1 = vector.load %arg2[%c0_2, %c0_3] : memref<384x128xf32, #tpu.memory_space<vmem>>, vector<384x128xf32>
    %c0_4 = arith.constant 0 : index
    %c0_5 = arith.constant 0 : index
    %2 = vector.load %arg3[%c0_4, %c0_5] : memref<1x128xf32, #tpu.memory_space<vmem>>, vector<1x128xf32>
    %c0_6 = arith.constant 0 : index
    %c0_7 = arith.constant 0 : index
    %3 = vector.load %arg4[%c0_6, %c0_7] : memref<1x128xf32, #tpu.memory_space<vmem>>, vector<1x128xf32>
    %4 = vector.extract_strided_slice %0 {offsets = [0, 0, 0], sizes = [2, 1, 128], strides = [1, 1, 1]} : vector<2x16x128xf32> to vector<2x1x128xf32>
    %5 = vector.extract_strided_slice %0 {offsets = [0, 0, 0], sizes = [2, 15, 128], strides = [1, 1, 1]} : vector<2x16x128xf32> to vector<2x15x128xf32>
    %6 = tpu.concatenate %4, %5 in 1 : vector<2x1x128xf32>, vector<2x15x128xf32> -> vector<2x16x128xf32>
    %7 = vector.extract_strided_slice %0 {offsets = [0, 1, 0], sizes = [2, 15, 128], strides = [1, 1, 1]} : vector<2x16x128xf32> to vector<2x15x128xf32>
    %8 = vector.extract_strided_slice %0 {offsets = [0, 15, 0], sizes = [2, 1, 128], strides = [1, 1, 1]} : vector<2x16x128xf32> to vector<2x1x128xf32>
    %9 = tpu.concatenate %7, %8 in 1 : vector<2x15x128xf32>, vector<2x1x128xf32> -> vector<2x16x128xf32>
    %10 = tpu.concatenate %6, %0, %9 in 2 : vector<2x16x128xf32>, vector<2x16x128xf32>, vector<2x16x128xf32> -> vector<2x16x384xf32>
    %11 = vector.shape_cast %10 : vector<2x16x384xf32> to vector<32x384xf32>
    %cst = arith.constant dense<0.000000e+00> : vector<32x128xf32>
    %12 = tpu.matmul %11, %1, %cst {dimension_numbers = #tpu.dot_dimension_numbers<[1], [0], [0], [1], [0, 0, 1, 1], [], []>} : vector<32x384xf32>, vector<384x128xf32>, vector<32x128xf32> -> vector<32x128xf32>
    %13 = vector.broadcast %2 : vector<1x128xf32> to vector<32x128xf32>
    %14 = arith.addf %12, %13 : vector<32x128xf32>
    %cst_8 = arith.constant 0.000000e+00 : f32
    %15 = vector.broadcast %cst_8 : f32 to vector<32x128xf32>
    %16 = arith.cmpf oge, %14, %15 : vector<32x128xf32>
    %17 = vector.broadcast %3 : vector<1x128xf32> to vector<32x128xf32>
    %18 = arith.mulf %17, %14 : vector<32x128xf32>
    %19 = arith.select %16, %14, %18 : vector<32x128xi1>, vector<32x128xf32>
    %20 = vector.shape_cast %19 : vector<32x128xf32> to vector<2x16x128xf32>
    %c0_9 = arith.constant 0 : index
    %c0_10 = arith.constant 0 : index
    %21 = vector.load %arg5[%c0_9, %c0_10] : memref<384x128xf32, #tpu.memory_space<vmem>>, vector<384x128xf32>
    %c0_11 = arith.constant 0 : index
    %c0_12 = arith.constant 0 : index
    %22 = vector.load %arg6[%c0_11, %c0_12] : memref<1x128xf32, #tpu.memory_space<vmem>>, vector<1x128xf32>
    %c0_13 = arith.constant 0 : index
    %c0_14 = arith.constant 0 : index
    %23 = vector.load %arg7[%c0_13, %c0_14] : memref<1x128xf32, #tpu.memory_space<vmem>>, vector<1x128xf32>
    %24 = vector.extract_strided_slice %20 {offsets = [0, 0, 0], sizes = [2, 1, 128], strides = [1, 1, 1]} : vector<2x16x128xf32> to vector<2x1x128xf32>
    %25 = vector.extract_strided_slice %20 {offsets = [0, 0, 0], sizes = [2, 15, 128], strides = [1, 1, 1]} : vector<2x16x128xf32> to vector<2x15x128xf32>
    %26 = tpu.concatenate %24, %25 in 1 : vector<2x1x128xf32>, vector<2x15x128xf32> -> vector<2x16x128xf32>
    %27 = vector.extract_strided_slice %20 {offsets = [0, 1, 0], sizes = [2, 15, 128], strides = [1, 1, 1]} : vector<2x16x128xf32> to vector<2x15x128xf32>
    %28 = vector.extract_strided_slice %20 {offsets = [0, 15, 0], sizes = [2, 1, 128], strides = [1, 1, 1]} : vector<2x16x128xf32> to vector<2x1x128xf32>
    %29 = tpu.concatenate %27, %28 in 1 : vector<2x15x128xf32>, vector<2x1x128xf32> -> vector<2x16x128xf32>
    %30 = tpu.concatenate %26, %20, %29 in 2 : vector<2x16x128xf32>, vector<2x16x128xf32>, vector<2x16x128xf32> -> vector<2x16x384xf32>
    %31 = vector.shape_cast %30 : vector<2x16x384xf32> to vector<32x384xf32>
    %cst_15 = arith.constant dense<0.000000e+00> : vector<32x128xf32>
    %32 = tpu.matmul %31, %21, %cst_15 {dimension_numbers = #tpu.dot_dimension_numbers<[1], [0], [0], [1], [0, 0, 1, 1], [], []>} : vector<32x384xf32>, vector<384x128xf32>, vector<32x128xf32> -> vector<32x128xf32>
    %33 = vector.broadcast %22 : vector<1x128xf32> to vector<32x128xf32>
    %34 = arith.addf %32, %33 : vector<32x128xf32>
    %cst_16 = arith.constant 0.000000e+00 : f32
    %35 = vector.broadcast %cst_16 : f32 to vector<32x128xf32>
    %36 = arith.cmpf oge, %34, %35 : vector<32x128xf32>
    %37 = vector.broadcast %23 : vector<1x128xf32> to vector<32x128xf32>
    %38 = arith.mulf %37, %34 : vector<32x128xf32>
    %39 = arith.select %36, %34, %38 : vector<32x128xi1>, vector<32x128xf32>
    %40 = vector.shape_cast %39 : vector<32x128xf32> to vector<2x16x128xf32>
    %cst_17 = arith.constant dense<0.000000e+00> : vector<2x128xf32>
    %41 = vector.multi_reduction <add>, %40, %cst_17 [1] : vector<2x16x128xf32> to vector<2x128xf32>
    %c0_18 = arith.constant 0 : index
    %c0_19 = arith.constant 0 : index
    %42 = vector.load %arg8[%c0_18, %c0_19] : memref<128x16xf32, #tpu.memory_space<vmem>>, vector<128x16xf32>
    %cst_20 = arith.constant dense<0.000000e+00> : vector<2x16xf32>
    %43 = tpu.matmul %41, %42, %cst_20 {dimension_numbers = #tpu.dot_dimension_numbers<[1], [0], [0], [1], [0, 0, 1, 1], [], []>} : vector<2x128xf32>, vector<128x16xf32>, vector<2x16xf32> -> vector<2x16xf32>
    %c0_21 = arith.constant 0 : index
    %c0_22 = arith.constant 0 : index
    %44 = vector.load %arg9[%c0_21, %c0_22] : memref<1x1xf32, #tpu.memory_space<vmem>>, vector<1x1xf32>
    %cst_23 = arith.constant 0.000000e+00 : f32
    %45 = vector.broadcast %cst_23 : f32 to vector<2x16xf32>
    %46 = arith.cmpf oge, %43, %45 : vector<2x16xf32>
    %47 = vector.broadcast %44 : vector<1x1xf32> to vector<2x16xf32>
    %48 = arith.mulf %47, %43 : vector<2x16xf32>
    %49 = arith.select %46, %43, %48 : vector<2x16xi1>, vector<2x16xf32>
    %c0_24 = arith.constant 0 : index
    %c0_25 = arith.constant 0 : index
    %50 = vector.load %arg10[%c0_24, %c0_25] : memref<16x128xf32, #tpu.memory_space<vmem>>, vector<16x128xf32>
    %cst_26 = arith.constant dense<0.000000e+00> : vector<2x128xf32>
    %51 = tpu.matmul %49, %50, %cst_26 {dimension_numbers = #tpu.dot_dimension_numbers<[1], [0], [0], [1], [0, 0, 1, 1], [], []>} : vector<2x16xf32>, vector<16x128xf32>, vector<2x128xf32> -> vector<2x128xf32>
    %52 = arith.negf %51 : vector<2x128xf32>
    %53 = math.exp %52 : vector<2x128xf32>
    %cst_27 = arith.constant 1.000000e+00 : f32
    %54 = vector.broadcast %cst_27 : f32 to vector<2x128xf32>
    %55 = arith.addf %54, %53 : vector<2x128xf32>
    %56 = arith.divf %54, %55 : vector<2x128xf32>
    %57 = vector.shape_cast %56 : vector<2x128xf32> to vector<2x1x128xf32>
    %58 = vector.broadcast %57 : vector<2x1x128xf32> to vector<2x16x128xf32>
    %59 = arith.mulf %40, %58 : vector<2x16x128xf32>
    %60 = arith.addf %59, %0 : vector<2x16x128xf32>
    %c0_28 = arith.constant 0 : index
    %c0_29 = arith.constant 0 : index
    %61 = vector.load %arg11[%c0_28, %c0_29] : memref<1x128xf32, #tpu.memory_space<vmem>>, vector<1x128xf32>
    %cst_30 = arith.constant 0.000000e+00 : f32
    %62 = vector.broadcast %cst_30 : f32 to vector<2x16x128xf32>
    %63 = arith.cmpf oge, %60, %62 : vector<2x16x128xf32>
    %64 = vector.shape_cast %61 : vector<1x128xf32> to vector<1x1x128xf32>
    %65 = vector.broadcast %64 : vector<1x1x128xf32> to vector<2x16x128xf32>
    %66 = arith.mulf %65, %60 : vector<2x16x128xf32>
    %67 = arith.select %63, %60, %66 : vector<2x16x128xi1>, vector<2x16x128xf32>
    %c0_31 = arith.constant 0 : index
    %c0_32 = arith.constant 0 : index
    %c0_33 = arith.constant 0 : index
    %68 = vector.load %arg12[%c0_31, %c0_32, %c0_33] : memref<2x16x128xf32, #tpu.memory_space<vmem>>, vector<2x16x128xf32>
    tpu.vector_store %arg12[%c0_31, %c0_32, %c0_33], %67 {strides = array<i32>} : memref<2x16x128xf32, #tpu.memory_space<vmem>>, vector<2x16x128xf32>,
    return
  }
  func.func @transform_0(%arg0: i32) -> (i32, i32, i32) {
    %c0_i32 = arith.constant 0 : i32
    %c0_i32_0 = arith.constant 0 : i32
    %c0_i32_1 = arith.constant 0 : i32
    %c0_i32_2 = arith.constant 0 : i32
    return %c0_i32, %c0_i32_0, %c0_i32_1 : i32, i32, i32
  }
  func.func @transform_1(%arg0: i32) -> (i32, i32) {
    %c0_i32 = arith.constant 0 : i32
    %c0_i32_0 = arith.constant 0 : i32
    %c0_i32_1 = arith.constant 0 : i32
    return %c0_i32, %c0_i32_0 : i32, i32
  }
  func.func @transform_2(%arg0: i32) -> (i32, i32) {
    %c0_i32 = arith.constant 0 : i32
    %c0_i32_0 = arith.constant 0 : i32
    %c0_i32_1 = arith.constant 0 : i32
    return %c0_i32, %c0_i32_0 : i32, i32
  }
  func.func @transform_3(%arg0: i32) -> (i32, i32) {
    %c0_i32 = arith.constant 0 : i32
    %c0_i32_0 = arith.constant 0 : i32
    %c0_i32_1 = arith.constant 0 : i32
    return %c0_i32, %c0_i32_0 : i32, i32
  }
  func.func @transform_4(%arg0: i32) -> (i32, i32) {
    %c0_i32 = arith.constant 0 : i32
    %c0_i32_0 = arith.constant 0 : i32
    %c0_i32_1 = arith.constant 0 : i32
    return %c0_i32, %c0_i32_0 : i32, i32
  }
  func.func @transform_5(%arg0: i32) -> (i32, i32) {
    %c0_i32 = arith.constant 0 : i32
    %c0_i32_0 = arith.constant 0 : i32
    %c0_i32_1 = arith.constant 0 : i32
    return %c0_i32, %c0_i32_0 : i32, i32
  }
  func.func @transform_6(%arg0: i32) -> (i32, i32) {
    %c0_i32 = arith.constant 0 : i32
    %c0_i32_0 = arith.constant 0 : i32
    %c0_i32_1 = arith.constant 0 : i32
    return %c0_i32, %c0_i32_0 : i32, i32
  }
  func.func @transform_7(%arg0: i32) -> (i32, i32) {
    %c0_i32 = arith.constant 0 : i32
    %c0_i32_0 = arith.constant 0 : i32
    %c0_i32_1 = arith.constant 0 : i32
    return %c0_i32, %c0_i32_0 : i32, i32
  }
  func.func @transform_8(%arg0: i32) -> (i32, i32) {
    %c0_i32 = arith.constant 0 : i32
    %c0_i32_0 = arith.constant 0 : i32
    %c0_i32_1 = arith.constant 0 : i32
    return %c0_i32, %c0_i32_0 : i32, i32
  }
  func.func @transform_9(%arg0: i32) -> (i32, i32) {
    %c0_i32 = arith.constant 0 : i32
    %c0_i32_0 = arith.constant 0 : i32
    %c0_i32_1 = arith.constant 0 : i32
    return %c0_i32, %c0_i32_0 : i32, i32
  }
  func.func @transform_10(%arg0: i32) -> (i32, i32) {
    %c0_i32 = arith.constant 0 : i32
    %c0_i32_0 = arith.constant 0 : i32
    %c0_i32_1 = arith.constant 0 : i32
    return %c0_i32, %c0_i32_0 : i32, i32
  }
  func.func @transform_11(%arg0: i32) -> (i32, i32, i32) {
    %c0_i32 = arith.constant 0 : i32
    %c0_i32_0 = arith.constant 0 : i32
    %c0_i32_1 = arith.constant 0 : i32
    %c0_i32_2 = arith.constant 0 : i32
    return %c0_i32, %c0_i32_0, %c0_i32_1 : i32, i32, i32
  }
}

</mosaic_0001>

<bundles_post_ra>
// kernel: tpu_custom_call.1
= control target key start
LH: loop header
LB: loop body
LE: loop exit
PB: predicated region body
PF: predicated region fallthrough
CT: control target
= control target key end

     0   :  { %s1470_s0 = inlined_call_operand.vmem [shape: f32[2,16,128], index: 0, kind: input, shape index: {}]   ;;  %s1471_s1 = inlined_call_operand.hbm [shape: f32[384,128], index: 1, kind: input, shape index: {}]   ;;  %s1472_s2 = inlined_call_operand.vmem [shape: f32[1,128], index: 2, kind: input, shape index: {}]   ;;  %s1473_s3 = inlined_call_operand.vmem [shape: f32[1,128], index: 3, kind: input, shape index: {}]   ;;  %s1474_s4 = inlined_call_operand.hbm [shape: f32[384,128], index: 4, kind: input, shape index: {}]   ;;  %s1475_s5 = inlined_call_operand.vmem [shape: f32[1,128], index: 5, kind: input, shape index: {}]   ;;  %s1476_s6 = inlined_call_operand.vmem [shape: f32[1,128], index: 6, kind: input, shape index: {}]   ;;  %s1477_s7 = inlined_call_operand.vmem [shape: f32[128,16], index: 7, kind: input, shape index: {}]   ;;  %s1478_s8 = inlined_call_operand.<no memory space> [shape: f32[1,1], index: 8, kind: input, shape index: {}]   ;;  %s1479_s9 = inlined_call_operand.vmem [shape: f32[16,128], index: 9, kind: input, shape index: {}]   ;;  %s1480_s10 = inlined_call_operand.vmem [shape: f32[1,128], index: 10, kind: input, shape index: {}]   ;;  %s1481_s11 = inlined_call_operand.hbm [shape: f32[2,16,128], index: 11, kind: output, shape index: {}]  }
   0x1   :  { %v16_v0 = vstv %s1478_s8 }
   0x2   :  { %17 = vst [vmem:[#allocation2] sm:$0x1] %v16_v0 }
   0x3   :  { %18 = vsyncpa [#allocation4], 0 }
   0x4   :  { %19 = vsyncpa [#allocation7], 0 }
   0x5   :  { %20 = vsyncpa [#allocation5], 0  ;;  %s1255_s19 = smov [#allocation3]  }
   0x6   :  { %s28_s20 = sshll.u32 %s1255_s19, 4  ;;  %s29_s20 = int_to_ptr.vmem [resolvable:$true] %s28_s20 }
   0x7   :  { %s1197_s21 = scalar_lea.vmem %s29_s20, 6144  ;;  %p1202_p1 = scmp.lt.s32.totalorder %s29_s20, %s29_s20 }
   0x8   :  { %p1198_p0 = scmp.ne.s32.totalorder %s29_s20, %s1197_s21  ;;  %p1203_p2 = scmp.lt.s32.totalorder %s1197_s21, %s1197_s21 }
   0xa   :  { %p1204_p3 = por %p1203_p2, %p1202_p1 }
   0xc   :  { %p1205_p4 = pnand %p1204_p3, %p1198_p0 }
   0xe   :  { %1208 = shalt.err (!%p1205_p4)
}
   0xf   :  { %s1256_s22 = smov 128   ;;  %s1257_s23 = smov 8  }
  0x10   :  { %34 = dma.hbm_to_vmem [thread:$0]  %s1471_s1, 6144, %s29_s20, [#allocation4], %s1256_s22, %s1256_s22, %s1257_s23  }
  0x11   :  { %s1258_s25 = smov [#allocation6]  }
  0x12   :  { %s44_s26 = sshll.u32 %s1258_s25, 4  ;;  %s45_s26 = int_to_ptr.vmem [resolvable:$true] %s44_s26 }
  0x13   :  { %s1217_s27 = scalar_lea.vmem %s45_s26, 6144  ;;  %p1222_p6 = scmp.lt.s32.totalorder %s45_s26, %s45_s26 }
  0x14   :  { %p1218_p5 = scmp.ne.s32.totalorder %s45_s26, %s1217_s27  ;;  %p1223_p7 = scmp.lt.s32.totalorder %s1217_s27, %s1217_s27 }
  0x16   :  { %p1224_p8 = por %p1223_p7, %p1222_p6 }
  0x18   :  { %p1225_p9 = pnand %p1224_p8, %p1218_p5 }
  0x1a   :  { %1228 = shalt.err (!%p1225_p9)
}
  0x1b   :  { %50 = dma.hbm_to_vmem [thread:$0]  %s1474_s4, 6144, %s45_s26, [#allocation7], %s1256_s22, %s1256_s22, %s1257_s23  }
  0x1c   :  { %1249 = dma.done.wait [#allocation4], 6144  }
  0x1d   :  { %1250 = vsyncadd [#allocation4], 4294961152 }
  0x1e   :  { %1251 = dma.done.wait [#allocation7], 6144  }
  0x1f   :  { %1252 = vsyncadd [#allocation7], 4294961152  ;;  %v104_v1 = vld [vmem:[#allocation3 + $0xf8] sm:$0xff]  ;;  %v103_v3 = vld [vmem:[#allocation3 + $0xf0] sm:$0xff]  ;;  %vm127_vm0 = vcmask 1040384   ;;  %vm140_vm1 = vcmask 1046528  }
  0x20   :  { %v88_v2 = vld [vmem:[#allocation3 + $0x78] sm:$0xff]  ;;  %909 = vmatprep.subr.mxu0 %v104_v1  ;;  %v87_v5 = vld [vmem:[#allocation3 + $0x70] sm:$0xff]  ;;  %v102_v6 = vld [vmem:[#allocation3 + $0xe8] sm:$0xff]  ;;  %vm1260_vm6 = vmmov 0   ;;  %vm651_vm11 = vcmask 1041409   ;;  %vm739_vm13 = vcmask 130048  }
  0x21   :  { %v120_v4 = vld [vmem:[#allocation3 + $0x178] sm:$0xff]  ;;  %910 = vmatpush3.msra.mxu0 %v88_v2  ;;  %v119_v7 = vld [vmem:[#allocation3 + $0x170] sm:$0xff]  ;;  %v86_v8 = vld [vmem:[#allocation3 + $0x68] sm:$0xff]  ;;  %s1263_s13 = smov [#allocation8]  }
  0x22   :  { %1057 = vmatprep.subr.mxu1 %v120_v4  ;;  %911 = vmatprep.subr.mxu0 %v103_v3  ;;  %v118_v9 = vld [vmem:[#allocation3 + $0x168] sm:$0xff]  ;;  %v101_v10 = vld [vmem:[#allocation3 + $0xe0] sm:$0xff]  ;;  %v100_v13 = vld [vmem:[#allocation3 + $0xd8] sm:$0xff]  ;;  %s888_s14 = sshll.u32 %s1263_s13, 4  ;;  %s889_s14 = int_to_ptr.vmem [resolvable:$true] %s888_s14 }
  0x23   :  { %1058 = vmatpush3.msra.mxu1 %v120_v4  ;;  %912 = vmatpush3.msra.mxu0 %v87_v5  ;;  %v85_v11 = vld [vmem:[#allocation3 + $0x60] sm:$0xff]  ;;  %v84_v14 = vld [vmem:[#allocation3 + $0x58] sm:$0xff]  ;;  %v99_v16 = vld [vmem:[#allocation3 + $0xd0] sm:$0xff]  ;;  %p1234_p11 = scmp.lt.s32.totalorder %s889_s14, %s889_s14 }
  0x24   :  { %1059 = vmatprep.subr.mxu1 %v119_v7  ;;  %913 = vmatprep.subr.mxu0 %v102_v6  ;;  %v117_v12 = vld [vmem:[#allocation3 + $0x160] sm:$0xff]  ;;  %v116_v15 = vld [vmem:[#allocation3 + $0x158] sm:$0xff]  ;;  %v83_v17 = vld [vmem:[#allocation3 + $0x50] sm:$0xff] }
  0x25   :  { %1060 = vmatpush3.msra.mxu1 %v119_v7  ;;  %914 = vmatpush3.msra.mxu0 %v86_v8  ;;  %v115_v18 = vld [vmem:[#allocation3 + $0x150] sm:$0xff]  ;;  %v98_v19 = vld [vmem:[#allocation3 + $0xc8] sm:$0xff]  ;;  %v97_v22 = vld [vmem:[#allocation3 + $0xc0] sm:$0xff] }
  0x26   :  { %1061 = vmatprep.subr.mxu1 %v118_v9  ;;  %915 = vmatprep.subr.mxu0 %v101_v10  ;;  %v82_v20 = vld [vmem:[#allocation3 + $0x48] sm:$0xff]  ;;  %v81_v23 = vld [vmem:[#allocation3 + $0x40] sm:$0xff]  ;;  %v96_v25 = vld [vmem:[#allocation3 + $0xb8] sm:$0xff] }
  0x27   :  { %1062 = vmatpush3.msra.mxu1 %v118_v9  ;;  %916 = vmatpush3.msra.mxu0 %v85_v11  ;;  %v114_v21 = vld [vmem:[#allocation3 + $0x148] sm:$0xff]  ;;  %v113_v24 = vld [vmem:[#allocation3 + $0x140] sm:$0xff]  ;;  %v80_v26 = vld [vmem:[#allocation3 + $0x38] sm:$0xff] }
  0x28   :  { %1063 = vmatprep.subr.mxu1 %v117_v12  ;;  %917 = vmatprep.subr.mxu0 %v100_v13  ;;  %v112_v27 = vld [vmem:[#allocation3 + $0x138] sm:$0xff]  ;;  %v95_v28 = vld [vmem:[#allocation3 + $0xb0] sm:$0xff]  ;;  %v94_v31 = vld [vmem:[#allocation3 + $0xa8] sm:$0xff] }
  0x29   :  { %1064 = vmatpush3.msra.mxu1 %v117_v12  ;;  %918 = vmatpush3.msra.mxu0 %v84_v14  ;;  %v79_v29 = vld [vmem:[#allocation3 + $0x30] sm:$0xff]  ;;  %v78_v32 = vld [vmem:[#allocation3 + $0x28] sm:$0xff]  ;;  %v93_v34 = vld [vmem:[#allocation3 + $0xa0] sm:$0xff] }
  0x2a   :  { %1065 = vmatprep.subr.mxu1 %v116_v15  ;;  %919 = vmatprep.subr.mxu0 %v99_v16  ;;  %v111_v30 = vld [vmem:[#allocation3 + $0x130] sm:$0xff]  ;;  %v110_v33 = vld [vmem:[#allocation3 + $0x128] sm:$0xff]  ;;  %v77_v35 = vld [vmem:[#allocation3 + $0x20] sm:$0xff] }
  0x2b   :  { %1066 = vmatpush3.msra.mxu1 %v116_v15  ;;  %920 = vmatpush3.msra.mxu0 %v83_v17  ;;  %v109_v36 = vld [vmem:[#allocation3 + $0x120] sm:$0xff]  ;;  %v92_v37 = vld [vmem:[#allocation3 + $0x98] sm:$0xff]  ;;  %v91_v41 = vld [vmem:[#allocation3 + $0x90] sm:$0xff] }
  0x2c   :  { %1067 = vmatprep.subr.mxu1 %v115_v18  ;;  %921 = vmatprep.subr.mxu0 %v98_v19  ;;  %v76_v38 = vld [vmem:[#allocation3 + $0x18] sm:$0xff]  ;;  %v1347_v42 = vld [vmem:[%s1470_s0 + $0x8] sm:$0xff]  ;;  %v75_v43 = vld [vmem:[#allocation3 + $0x10] sm:$0xff] }
  0x2d   :  { %1068 = vmatpush3.msra.mxu1 %v115_v18  ;;  %922 = vmatpush3.msra.mxu0 %v82_v20  ;;  %v108_v39 = vld [vmem:[#allocation3 + $0x118] sm:$0xff]  ;;  %v107_v44 = vld [vmem:[#allocation3 + $0x110] sm:$0xff]  ;;  %v90_v45 = vld [vmem:[#allocation3 + $0x88] sm:$0xff]  ;;  %v142_v52 = vrot.slane %v1347_v42, 1  ;;  %v129_v59 = vrot.slane %v1347_v42, 7 }
  0x2e   :  { %1069 = vmatprep.subr.mxu1 %v114_v21  ;;  %923 = vmatprep.subr.mxu0 %v97_v22  ;;  %v1342_v40 = vld [vmem:[%s1470_s0] sm:$0xff]  ;;  %v1353_v47 = vld [vmem:[%s1470_s0 + $0x10] sm:$0xff]  ;;  %v1358_v48 = vld [vmem:[%s1470_s0 + $0x18] sm:$0xff] }
  0x2f   :  { %1070 = vmatpush3.msra.mxu1 %v114_v21  ;;  %924 = vmatpush3.msra.mxu0 %v81_v23  ;;  %v128_v46 = vrot.slane %v1342_v40, 7  ;;  %v74_v49 = vld [vmem:[#allocation3 + $0x8] sm:$0xff]  ;;  %v141_v51 = vrot.slane %v1342_v40, 1  ;;  %v89_v53 = vld [vmem:[#allocation3 + $0x80] sm:$0xff]  ;;  %v144_v55 = vrot.slane %v1353_v47, 1  ;;  %v145_v56 = vrot.slane %v1358_v48, 1 }
  0x30   :  { %1071 = vmatprep.subr.mxu1 %v113_v24  ;;  %925 = vmatprep.subr.mxu0 %v96_v25  ;;  %v106_v50 = vld [vmem:[#allocation3 + $0x108] sm:$0xff]  ;;  %v73_v54 = vld [vmem:[#allocation3] sm:$0xff]  ;;  %v151_v61 = vsel %vm140_vm1, %v142_v52, %v1347_v42  ;;  %v378_v63 = vld [vmem:[#allocation6 + $0xf8] sm:$0xff]  ;;  %v131_v1 = vrot.slane %v1353_v47, 7  ;;  %v132_v8 = vrot.slane %v1358_v48, 7 }
  0x31   :  { %1072 = vmatpush3.msra.mxu1 %v113_v24  ;;  %926 = vmatpush3.msra.mxu0 %v80_v26  ;;  %v138_v57 = vsel %vm127_vm0, %v1342_v40, %v128_v46  ;;  %v105_v58 = vld [vmem:[#allocation3 + $0x100] sm:$0xff]  ;;  %v143_v60 = vsel %vm140_vm1, %v141_v51, %v142_v52  ;;  %v146_v62 = vsel %vm140_vm1, %v144_v55, %v145_v56  ;;  %v394_v2 = vld [vmem:[#allocation6 + $0x178] sm:$0xff]  ;;  %v377_v5 = vld [vmem:[#allocation6 + $0xf0] sm:$0xff] }
  0x32   :  { %1073 = vmatprep.subr.mxu1 %v112_v27  ;;  %927 = vmatprep.subr.mxu0 %v95_v28  ;;  %v130_v0 = vsel %vm127_vm0, %v128_v46, %v129_v59  ;;  %v362_v3 = vld [vmem:[#allocation6 + $0x78] sm:$0xff]  ;;  %v152_v4 = vsel %vm140_vm1, %v145_v56, %v1358_v48  ;;  %v361_v6 = vld [vmem:[#allocation6 + $0x70] sm:$0xff]  ;;  %v139_v7 = vsel %vm127_vm0, %v1353_v47, %v131_v1  ;;  %v376_v9 = vld [vmem:[#allocation6 + $0xe8] sm:$0xff] }
  0x33   :  { %1074 = vmatpush3.msra.mxu1 %v112_v27  ;;  %928 = vmatpush3.msra.mxu0 %v79_v29  ;;  %v360_v10 = vld [vmem:[#allocation6 + $0x68] sm:$0xff]  ;;  %v375_v11 = vld [vmem:[#allocation6 + $0xe0] sm:$0xff]  ;;  %v393_v12 = vld [vmem:[#allocation6 + $0x170] sm:$0xff]  ;;  %v133_v14 = vsel %vm127_vm0, %v131_v1, %v132_v8 }
  0x34   :  { %1075 = vmatprep.subr.mxu1 %v111_v30  ;;  %929 = vmatprep.subr.mxu0 %v94_v31  ;;  %v359_v13 = vld [vmem:[#allocation6 + $0x60] sm:$0xff]  ;;  %v374_v15 = vld [vmem:[#allocation6 + $0xd8] sm:$0xff]  ;;  %v392_v17 = vld [vmem:[#allocation6 + $0x168] sm:$0xff] }
  0x35   :  { %1076 = vmatpush3.msra.mxu1 %v111_v30  ;;  %930 = vmatpush3.msra.mxu0 %v78_v32  ;;  %v358_v16 = vld [vmem:[#allocation6 + $0x58] sm:$0xff]  ;;  %v373_v18 = vld [vmem:[#allocation6 + $0xd0] sm:$0xff]  ;;  %v391_v20 = vld [vmem:[#allocation6 + $0x160] sm:$0xff] }
  0x36   :  { %1077 = vmatprep.subr.mxu1 %v110_v33  ;;  %931 = vmatprep.subr.mxu0 %v93_v34  ;;  %v357_v19 = vld [vmem:[#allocation6 + $0x50] sm:$0xff]  ;;  %v372_v21 = vld [vmem:[#allocation6 + $0xc8] sm:$0xff]  ;;  %v390_v23 = vld [vmem:[#allocation6 + $0x158] sm:$0xff] }
  0x37   :  { %1078 = vmatpush3.msra.mxu1 %v110_v33  ;;  %932 = vmatpush3.msra.mxu0 %v77_v35  ;;  %v356_v22 = vld [vmem:[#allocation6 + $0x48] sm:$0xff]  ;;  %v371_v24 = vld [vmem:[#allocation6 + $0xc0] sm:$0xff]  ;;  %v389_v26 = vld [vmem:[#allocation6 + $0x150] sm:$0xff] }
  0x38   :  { %1079 = vmatprep.subr.mxu1 %v109_v36  ;;  %933 = vmatprep.subr.mxu0 %v92_v37  ;;  %v355_v25 = vld [vmem:[#allocation6 + $0x40] sm:$0xff]  ;;  %v370_v27 = vld [vmem:[#allocation6 + $0xb8] sm:$0xff]  ;;  %v388_v29 = vld [vmem:[#allocation6 + $0x148] sm:$0xff] }
  0x39   :  { %1080 = vmatpush3.msra.mxu1 %v109_v36  ;;  %934 = vmatpush3.msra.mxu0 %v76_v38  ;;  %v354_v28 = vld [vmem:[#allocation6 + $0x38] sm:$0xff]  ;;  %v369_v30 = vld [vmem:[#allocation6 + $0xb0] sm:$0xff]  ;;  %v387_v32 = vld [vmem:[#allocation6 + $0x140] sm:$0xff] }
  0x3a   :  { %1081 = vmatprep.subr.mxu1 %v108_v39  ;;  %935 = vmatprep.subr.mxu0 %v91_v41  ;;  %v353_v31 = vld [vmem:[#allocation6 + $0x30] sm:$0xff]  ;;  %v368_v33 = vld [vmem:[#allocation6 + $0xa8] sm:$0xff]  ;;  %v386_v35 = vld [vmem:[#allocation6 + $0x138] sm:$0xff] }
  0x3b   :  { %1082 = vmatpush3.msra.mxu1 %v108_v39  ;;  %936 = vmatpush3.msra.mxu0 %v75_v43  ;;  %v352_v34 = vld [vmem:[#allocation6 + $0x28] sm:$0xff]  ;;  %v367_v36 = vld [vmem:[#allocation6 + $0xa0] sm:$0xff]  ;;  %v385_v38 = vld [vmem:[#allocation6 + $0x130] sm:$0xff] }
  0x3c   :  { %1083 = vmatprep.subr.mxu1 %v107_v44  ;;  %937 = vmatprep.subr.mxu0 %v90_v45  ;;  %v351_v37 = vld [vmem:[#allocation6 + $0x20] sm:$0xff]  ;;  %v366_v39 = vld [vmem:[#allocation6 + $0x98] sm:$0xff]  ;;  %v384_v43 = vld [vmem:[#allocation6 + $0x128] sm:$0xff] }
  0x3d   :  { %1084 = vmatpush3.msra.mxu1 %v107_v44  ;;  %938 = vmatpush3.msra.mxu0 %v74_v49  ;;  %v350_v41 = vld [vmem:[#allocation6 + $0x18] sm:$0xff]  ;;  %v365_v44 = vld [vmem:[#allocation6 + $0x90] sm:$0xff]  ;;  %v383_v46 = vld [vmem:[#allocation6 + $0x120] sm:$0xff] }
  0x3e   :  { %1085 = vmatprep.subr.mxu1 %v106_v50  ;;  %939 = vmatprep.subr.mxu0 %v89_v53  ;;  %v349_v45 = vld [vmem:[#allocation6 + $0x10] sm:$0xff]  ;;  %v364_v49 = vld [vmem:[#allocation6 + $0x88] sm:$0xff]  ;;  %v382_v51 = vld [vmem:[#allocation6 + $0x118] sm:$0xff] }
  0x3f   :  { %223 = vmatprep.mubr.f32.mxu0 %v1342_v40  ;;  %940 = vmatpush3.msra.mxu0 %v73_v54  ;;  %v363_v52 = vld [vmem:[#allocation6 + $0x80] sm:$0xff]  ;;  %v381_v54 = vld [vmem:[#allocation6 + $0x110] sm:$0xff]  ;;  %v380_v55 = vld [vmem:[#allocation6 + $0x108] sm:$0xff] }
  0x40   :  { %1086 = vmatpush3.msra.mxu1 %v106_v50  ;;  %224 = vmatmul.mubr.f32.vlgmr.msra.gmra.mxu0 %v138_v57  ;;  %v348_v50 = vld [vmem:[#allocation6 + $0x8] sm:$0xff]  ;;  %v347_v53 = vld [vmem:[#allocation6] sm:$0xff] }
  0x41   :  { %1087 = vmatprep.subr.mxu1 %v105_v58  ;;  %1089 = vmatprep.mubr.f32.mxu1 %v143_v60  ;;  %v379_v56 = vld [vmem:[#allocation6 + $0x100] sm:$0xff]  ;;  %v901_v60 = vld [vmem:[%s1472_s2] ss:$0 sm:$0xff] }
  0x42   :  { %1088 = vmatpush3.msra.mxu1 %v105_v58  ;;  %228 = vmatprep.mubr.f32.mxu0 %v1347_v42 }
  0x43   :  { %1090 = vmatmul.mubr.f32.vlgmr.msra.gmra.mxu1 %v151_v61  ;;  %973 = vmatprep.subr.mxu0 %v378_v63 }
  0x44   :  { %1092 = vmatprep.mubr.f32.mxu1 %v146_v62  ;;  %229 = vmatmul.mubr.f32.gmra.mxu0 %v130_v0  ;;  %v902_v0 = vld [vmem:[%s1473_s3] ss:$0 sm:$0xff] }
  0x45   :  { %1095 = vmatprep.subr.mxu1 %v394_v2  ;;  %233 = vmatprep.mubr.f32.mxu0 %v1353_v47 }
  0x46   :  { %974 = vmatpush3.msra.mxu0 %v362_v3  ;;  %1096 = vmatpush3.msra.mxu1 %v394_v2 }
  0x47   :  { %1093 = vmatmul.mubr.f32.gmra.mxu1 %v152_v4  ;;  %975 = vmatprep.subr.mxu0 %v377_v5 }
  0x48   :  { %976 = vmatpush3.msra.mxu0 %v361_v6  ;;  %1097 = vmatprep.subr.mxu1 %v393_v12 }
  0x49   :  { %234 = vmatmul.mubr.f32.gmra.mxu0 %v139_v7  ;;  %977 = vmatprep.subr.mxu0 %v376_v9 }
  0x4a   :  { %238 = vmatprep.mubr.f32.mxu0 %v1358_v48  ;;  %978 = vmatpush3.msra.mxu0 %v360_v10 }
  0x4b   :  { %979 = vmatprep.subr.mxu0 %v375_v11  ;;  %1098 = vmatpush3.msra.mxu1 %v393_v12 }
  0x4c   :  { %980 = vmatpush3.msra.mxu0 %v359_v13  ;;  %1099 = vmatprep.subr.mxu1 %v392_v17 }
  0x4d   :  { %239 = vmatmul.mubr.f32.gmra.mxu0 %v133_v14  ;;  %981 = vmatprep.subr.mxu0 %v374_v15 }
  0x4e   :  { %982 = vmatpush3.msra.mxu0 %v358_v16  ;;  %1100 = vmatpush3.msra.mxu1 %v392_v17 }
  0x4f   :  { %983 = vmatprep.subr.mxu0 %v373_v18  ;;  %1101 = vmatprep.subr.mxu1 %v391_v20 }
  0x50   :  { %984 = vmatpush3.msra.mxu0 %v357_v19  ;;  %1102 = vmatpush3.msra.mxu1 %v391_v20 }
  0x51   :  { %985 = vmatprep.subr.mxu0 %v372_v21  ;;  %1103 = vmatprep.subr.mxu1 %v390_v23 }
  0x52   :  { %986 = vmatpush3.msra.mxu0 %v356_v22  ;;  %1104 = vmatpush3.msra.mxu1 %v390_v23 }
  0x53   :  { %987 = vmatprep.subr.mxu0 %v371_v24  ;;  %1105 = vmatprep.subr.mxu1 %v389_v26 }
  0x54   :  { %988 = vmatpush3.msra.mxu0 %v355_v25  ;;  %1106 = vmatpush3.msra.mxu1 %v389_v26 }
  0x55   :  { %989 = vmatprep.subr.mxu0 %v370_v27  ;;  %1107 = vmatprep.subr.mxu1 %v388_v29 }
  0x56   :  { %990 = vmatpush3.msra.mxu0 %v354_v28  ;;  %1108 = vmatpush3.msra.mxu1 %v388_v29 }
  0x57   :  { %991 = vmatprep.subr.mxu0 %v369_v30  ;;  %1109 = vmatprep.subr.mxu1 %v387_v32 }
  0x58   :  { %992 = vmatpush3.msra.mxu0 %v353_v31  ;;  %1110 = vmatpush3.msra.mxu1 %v387_v32 }
  0x59   :  { %993 = vmatprep.subr.mxu0 %v368_v33  ;;  %1111 = vmatprep.subr.mxu1 %v386_v35 }
  0x5a   :  { %994 = vmatpush3.msra.mxu0 %v352_v34  ;;  %1112 = vmatpush3.msra.mxu1 %v386_v35 }
  0x5b   :  { %995 = vmatprep.subr.mxu0 %v367_v36  ;;  %1113 = vmatprep.subr.mxu1 %v385_v38 }
  0x5c   :  { %996 = vmatpush3.msra.mxu0 %v351_v37  ;;  %1114 = vmatpush3.msra.mxu1 %v385_v38 }
  0x5d   :  { %997 = vmatprep.subr.mxu0 %v366_v39  ;;  %1115 = vmatprep.subr.mxu1 %v384_v43 }
  0x5e   :  { %998 = vmatpush3.msra.mxu0 %v350_v41  ;;  %1116 = vmatpush3.msra.mxu1 %v384_v43 }
  0x5f   :  { %999 = vmatprep.subr.mxu0 %v365_v44  ;;  %1117 = vmatprep.subr.mxu1 %v383_v46 }
  0x60   :  { %1000 = vmatpush3.msra.mxu0 %v349_v45  ;;  %1118 = vmatpush3.msra.mxu1 %v383_v46  ;;  %v1259_v45 = vmov 0.0   ;;  %v648_v46 = vld [vmem:[%s1477_s7 + $0x78] sm:$0xff] }
  0x61   :  { %1001 = vmatprep.subr.mxu0 %v364_v49  ;;  %1119 = vmatprep.subr.mxu1 %v382_v51  ;;  %v647_v49 = vld [vmem:[%s1477_s7 + $0x70] sm:$0xff] }
  0x62   :  { %1002 = vmatpush3.msra.mxu0 %v348_v50  ;;  %1120 = vmatpush3.msra.mxu1 %v382_v51  ;;  %v646_v50 = vld [vmem:[%s1477_s7 + $0x68] sm:$0xff]  ;;  %v645_v51 = vld [vmem:[%s1477_s7 + $0x60] sm:$0xff] }
  0x63   :  { %1003 = vmatprep.subr.mxu0 %v363_v52  ;;  %1121 = vmatprep.subr.mxu1 %v381_v54  ;;  %v644_v52 = vld [vmem:[%s1477_s7 + $0x58] sm:$0xff] }
  0x64   :  { %1004 = vmatpush3.msra.mxu0 %v347_v53  ;;  %1122 = vmatpush3.msra.mxu1 %v381_v54  ;;  %v643_v53 = vld [vmem:[%s1477_s7 + $0x50] sm:$0xff]  ;;  %v642_v54 = vld [vmem:[%s1477_s7 + $0x48] sm:$0xff] }
  0x65   :  { %1123 = vmatprep.subr.mxu1 %v380_v55  ;;  %1133 = vmatprep.subr.mxu0 %v1259_v45 }
  0x66   :  { %1124 = vmatpush3.msra.mxu1 %v380_v55  ;;  %v641_v55 = vld [vmem:[%s1477_s7 + $0x40] sm:$0xff] }
  0x67   :  { %1125 = vmatprep.subr.mxu1 %v379_v56 }
  0x68   :  { %1126 = vmatpush3.msra.mxu1 %v379_v56  ;;  %v640_v56 = vld [vmem:[%s1477_s7 + $0x38] sm:$0xff] }
  0x69   :  { %1168 = vmatprep.subr.mxu1 %v1259_v45 }
 0x100   :  { %v941_v57 = vpop.f32.mrf.mxu0 }
 0x102   :  { %v942_v58 = vpop.f32.mrf.mxu0 }
 0x103   :  { %v1091_v59 = vpop.f32.mrf.mxu1  ;;  %v943_v61 = vadd.f32 %v942_v58, %v941_v57  ;;  %v639_v57 = vld [vmem:[%s1477_s7 + $0x30] sm:$0xff]  ;;  %v638_v58 = vld [vmem:[%s1477_s7 + $0x28] sm:$0xff] }
 0x104   :  { %v944_v62 = vpop.f32.mrf.mxu0 }
 0x105   :  { %v226_v63 = vadd.f32 %v943_v61, %v901_v60  ;;  %v310_v1 = vpop.f32.mrf.mxu1  ;;  %v635_v61 = vld [vmem:[%s1477_s7 + $0x10] sm:$0xff] }
 0x106   :  { %v945_v2 = vpop.f32.mrf.mxu0 }
 0x107   :  { %v311_v3 = vadd.f32 %v310_v1, %v226_v63  ;;  %v946_v4 = vadd.f32 %v945_v2, %v944_v62  ;;  %v1094_v9 = vpop.f32.mrf.mxu1  ;;  %v634_v62 = vld [vmem:[%s1477_s7 + $0x8] sm:$0xff]  ;;  %v633_v63 = vld [vmem:[%s1477_s7] sm:$0xff]  ;;  %v1261_v2 = vmov 0  }
 0x108   :  { %v738_v1 = vld [vmem:[%s1479_s9 + $0x8] sm:$0xff]  ;;  %1184 = vset.pattern.permute.xlu0 %v1261_v2 }
 0x109   :  { %v947_v5 = vpop.f32.mrf.mxu0  ;;  %vm329_vm2 = vcmp.ge.f32.partialorder %v311_v3, 0.0  ;;  %v339_v6 = vmul.f32 %v902_v0, %v311_v3  ;;  %v231_v7 = vadd.f32 %v946_v4, %v901_v60  ;;  %v320_v17 = vpop.f32.mrf.mxu1 }
 0x10b   :  { %v948_v8 = vpop.f32.mrf.mxu0  ;;  %v316_v10 = vadd.f32 %v1091_v59, %v231_v7  ;;  %v343_v12 = vsel %vm329_vm2, %v311_v3, %v339_v6  ;;  %v637_v59 = vld [vmem:[%s1477_s7 + $0x20] sm:$0xff] }
 0x10c   :  { %v949_v11 = vadd.f32 %v948_v8, %v947_v5  ;;  %v401_v14 = vrot.slane %v343_v12, 7  ;;  %495 = vmatprep.mubr.f32.mxu0 %v343_v12  ;;  %v413_v24 = vrot.slane %v343_v12, 1  ;;  %v903_v5 = vld [vmem:[%s1475_s5] ss:$0 sm:$0xff] }
 0x10d   :  { %v950_v13 = vpop.f32.mrf.mxu0  ;;  %vm330_vm3 = vcmp.ge.f32.partialorder %v316_v10, 0.0  ;;  %v340_v16 = vmul.f32 %v902_v0, %v316_v10 }
 0x10e   :  { %v236_v15 = vadd.f32 %v949_v11, %v901_v60  ;;  %v411_v19 = vsel %vm127_vm0, %v343_v12, %v401_v14 }
 0x10f   :  { %v951_v18 = vpop.f32.mrf.mxu0  ;;  %496 = vmatmul.mubr.f32.vlgmr.msra.gmra.mxu0 %v411_v19  ;;  %v344_v22 = vsel %vm330_vm3, %v316_v10, %v340_v16 }
 0x110   :  { %v321_v20 = vadd.f32 %v320_v17, %v236_v15  ;;  %v952_v21 = vadd.f32 %v951_v18, %v950_v13  ;;  %500 = vmatprep.mubr.f32.mxu0 %v344_v22  ;;  %v402_v23 = vrot.slane %v344_v22, 7  ;;  %v414_v25 = vrot.slane %v344_v22, 1  ;;  %1134 = vmatpush3.msra.mxu0 %v648_v46  ;;  %v904_v13 = vld [vmem:[%s1476_s6] ss:$0 sm:$0xff] }
 0x111   :  { %1135 = vmatprep.subr.mxu0 %v1259_v45 }
 0x112   :  { %vm331_vm4 = vcmp.ge.f32.partialorder %v321_v20, 0.0  ;;  %v341_v26 = vmul.f32 %v902_v0, %v321_v20  ;;  %v241_v27 = vadd.f32 %v952_v21, %v901_v60  ;;  %v403_v28 = vsel %vm127_vm0, %v401_v14, %v402_v23  ;;  %1136 = vmatpush3.msra.mxu0 %v647_v49  ;;  %v636_v60 = vld [vmem:[%s1477_s7 + $0x18] sm:$0xff] }
 0x113   :  { %v415_v29 = vsel %vm140_vm1, %v413_v24, %v414_v25  ;;  %v423_v30 = vsel %vm140_vm1, %v414_v25, %v344_v22  ;;  %501 = vmatmul.mubr.f32.gmra.mxu0 %v403_v28  ;;  %1137 = vmatprep.subr.mxu0 %v1259_v45 }
 0x114   :  { %v326_v31 = vadd.f32 %v1094_v9, %v241_v27  ;;  %1127 = vmatprep.mubr.f32.mxu1 %v415_v29  ;;  %v345_v32 = vsel %vm331_vm4, %v321_v20, %v341_v26  ;;  %1138 = vmatpush3.msra.mxu0 %v646_v50 }
 0x115   :  { %505 = vmatprep.mubr.f32.mxu0 %v345_v32  ;;  %1128 = vmatmul.mubr.f32.vlgmr.msra.gmra.mxu1 %v423_v30  ;;  %v404_v33 = vrot.slane %v345_v32, 7  ;;  %v416_v38 = vrot.slane %v345_v32, 1 }
 0x116   :  { %vm332_vm5 = vcmp.ge.f32.partialorder %v326_v31, 0.0  ;;  %v342_v34 = vmul.f32 %v902_v0, %v326_v31  ;;  %1139 = vmatprep.subr.mxu0 %v1259_v45  ;;  %v905_v0 = vld [vmem:[#allocation2] ss:$0 sm:$0xff]  ;;  %1169 = vmatpush3.msra.mxu1 %v738_v1 }
 0x117   :  { %v412_v35 = vsel %vm127_vm0, %v345_v32, %v404_v33  ;;  %1140 = vmatpush3.msra.mxu0 %v645_v51  ;;  %732 = vperm.xlu0 %1184, %v905_v0  }
 0x118   :  { %506 = vmatmul.mubr.f32.gmra.mxu0 %v412_v35  ;;  %v346_v36 = vsel %vm332_vm5, %v326_v31, %v342_v34  ;;  %1141 = vmatprep.subr.mxu0 %v1259_v45 }
 0x119   :  { %510 = vmatprep.mubr.f32.mxu0 %v346_v36  ;;  %v405_v37 = vrot.slane %v346_v36, 7  ;;  %v417_v39 = vrot.slane %v346_v36, 1  ;;  %1142 = vmatpush3.msra.mxu0 %v644_v52 }
 0x11a   :  { %1143 = vmatprep.subr.mxu0 %v1259_v45  ;;  %1170 = vmatprep.subr.mxu1 %v1259_v45 }
 0x11b   :  { %v406_v41 = vsel %vm127_vm0, %v404_v33, %v405_v37  ;;  %v418_v43 = vsel %vm140_vm1, %v416_v38, %v417_v39  ;;  %v424_v44 = vsel %vm140_vm1, %v417_v39, %v346_v36  ;;  %1144 = vmatpush3.msra.mxu0 %v643_v53 }
 0x11c   :  { %511 = vmatmul.mubr.f32.gmra.mxu0 %v406_v41  ;;  %1130 = vmatprep.mubr.f32.mxu1 %v418_v43 }
 0x11d   :  { %1131 = vmatmul.mubr.f32.gmra.mxu1 %v424_v44  ;;  %1145 = vmatprep.subr.mxu0 %v1259_v45 }
 0x11e   :  { %1146 = vmatpush3.msra.mxu0 %v642_v54  ;;  %1165 = vmatprep.mubr.msk.f32.mxu0 %vm1260_vm6, %v1259_v45 }
 0x11f   :  { %1147 = vmatprep.subr.mxu0 %v1259_v45  ;;  %1172 = vmatprep.mubr.msk.f32.mxu1 %vm1260_vm6, %v1259_v45 }
 0x120   :  { %1148 = vmatpush3.msra.mxu0 %v641_v55 }
 0x121   :  { %1149 = vmatprep.subr.mxu0 %v1259_v45 }
 0x122   :  { %1150 = vmatpush3.msra.mxu0 %v640_v56  ;;  %v737_v56 = vld [vmem:[%s1479_s9] sm:$0xff] }
 0x123   :  { %1151 = vmatprep.subr.mxu0 %v1259_v45  ;;  %1171 = vmatpush3.msra.mxu1 %v737_v56 }
 0x124   :  { %1152 = vmatpush3.msra.mxu0 %v639_v57 }
 0x125   :  { %1153 = vmatprep.subr.mxu0 %v1259_v45 }
 0x126   :  { %1154 = vmatpush3.msra.mxu0 %v638_v58 }
 0x127   :  { %1155 = vmatprep.subr.mxu0 %v1259_v45 }
 0x128   :  { %1156 = vmatpush3.msra.mxu0 %v637_v59 }
 0x129   :  { %1157 = vmatprep.subr.mxu0 %v1259_v45 }
 0x12a   :  { %1158 = vmatpush3.msra.mxu0 %v636_v60 }
 0x12b   :  { %1159 = vmatprep.subr.mxu0 %v1259_v45 }
 0x12c   :  { %1160 = vmatpush3.msra.mxu0 %v635_v61 }
 0x12d   :  { %1161 = vmatprep.subr.mxu0 %v1259_v45 }
 0x12e   :  { %1162 = vmatpush3.msra.mxu0 %v634_v62 }
 0x12f   :  { %1163 = vmatprep.subr.mxu0 %v1259_v45 }
 0x130   :  { %1164 = vmatpush3.msra.mxu0 %v633_v63 }
 0x192   :  { %v733_v57 = vpop.permute.xlu0 %732 }
 0x1cf   :  { %v1005_v3 = vpop.f32.mrf.mxu0 }
 0x1d1   :  { %v1006_v4 = vpop.f32.mrf.mxu0 }
 0x1d2   :  { %v1007_v6 = vadd.f32 %v1006_v4, %v1005_v3  ;;  %v1262_v3 = vmov 1966171168  }
 0x1d3   :  { %v1008_v7 = vpop.f32.mrf.mxu0  ;;  %v821_v4 = vunpack.c.l.s4 %v1262_v3 }
 0x1d4   :  { %v498_v9 = vadd.f32 %v1007_v6, %v903_v5 }
 0x1d5   :  { %v1129_v8 = vpop.f32.mrf.mxu1  ;;  %v1009_v10 = vpop.f32.mrf.mxu0  ;;  %v822_v6 = vunpack.c.0.s8 %v821_v4 }
 0x1d6   :  { %v1010_v11 = vadd.f32 %v1009_v10, %v1008_v7 }
 0x1d7   :  { %v582_v12 = vpop.f32.mrf.mxu1 }
 0x1d8   :  { %v583_v14 = vadd.f32 %v582_v12, %v498_v9  ;;  %v1011_v15 = vpop.f32.mrf.mxu0  ;;  %v503_v16 = vadd.f32 %v1010_v11, %v903_v5 }
 0x1da   :  { %v1012_v17 = vpop.f32.mrf.mxu0  ;;  %v588_v18 = vadd.f32 %v1129_v8, %v503_v16  ;;  %v611_v19 = vmul.f32 %v904_v13, %v583_v14  ;;  %vm601_vm7 = vcmp.ge.f32.partialorder %v583_v14, 0.0 }
 0x1db   :  { %v1013_v20 = vadd.f32 %v1012_v17, %v1011_v15 }
 0x1dc   :  { %v1014_v21 = vpop.f32.mrf.mxu0  ;;  %vm602_vm8 = vcmp.ge.f32.partialorder %v588_v18, 0.0  ;;  %v612_v22 = vmul.f32 %v904_v13, %v588_v18  ;;  %v615_v26 = vsel %vm601_vm7, %v583_v14, %v611_v19 }
 0x1dd   :  { %v1132_v23 = vpop.f32.mrf.mxu1  ;;  %v508_v24 = vadd.f32 %v1013_v20, %v903_v5 }
 0x1de   :  { %v1015_v25 = vpop.f32.mrf.mxu0  ;;  %v616_v27 = vsel %vm602_vm8, %v588_v18, %v612_v22 }
 0x1df   :  { %v1016_v28 = vadd.f32 %v1015_v25, %v1014_v21  ;;  %v592_v29 = vpop.f32.mrf.mxu1  ;;  %v619_v30 = vadd.f32 %v616_v27, %v615_v26 }
 0x1e0   :  { %v593_v31 = vadd.f32 %v592_v29, %v508_v24 }
 0x1e1   :  { %v513_v32 = vadd.f32 %v1016_v28, %v903_v5  ;;  %v620_v33 = vrot.slane %v619_v30, 4  ;;  %v823_v5 = vlaneseq }
 0x1e2   :  { %v613_v35 = vmul.f32 %v904_v13, %v593_v31  ;;  %vm603_vm9 = vcmp.ge.f32.partialorder %v593_v31, 0.0 }
 0x1e3   :  { %v598_v34 = vadd.f32 %v1132_v23, %v513_v32  ;;  %v621_v36 = vadd.f32 %v620_v33, %v619_v30  ;;  %v824_v7 = vshrl.u32 %v823_v5, 7  ;;  %v908_v23 = vld [vmem:[%s1480_s10] ss:$0 sm:$0xff]  ;;  %s1229_s10 = scalar_lea.vmem %s889_s14, 512 }
 0x1e4   :  { %v617_v38 = vsel %vm603_vm9, %v593_v31, %v613_v35  ;;  %p1230_p10 = scmp.ne.s32.totalorder %s889_s14, %s1229_s10  ;;  %p1235_p12 = scmp.lt.s32.totalorder %s1229_s10, %s1229_s10 }
 0x1e5   :  { %vm604_vm10 = vcmp.ge.f32.partialorder %v598_v34, 0.0  ;;  %v614_v37 = vmul.f32 %v904_v13, %v598_v34  ;;  %v622_v41 = vrot.slane %v621_v36, 2  ;;  %v825_v8 = vsub.s32 %v822_v6, %v824_v7 }
 0x1e6   :  { %v844_v11 = vsub.s32 0, %v824_v7  ;;  %p1236_p13 = por %p1235_p12, %p1234_p11 }
 0x1e7   :  { %v618_v39 = vsel %vm604_vm10, %v598_v34, %v614_v37  ;;  %v623_v45 = vadd.f32 %v622_v41, %v621_v36 }
 0x1e8   :  { %v626_v43 = vadd.f32 %v618_v39, %v617_v38  ;;  %p1237_p0 = pnand %p1236_p13, %p1230_p10 }
 0x1e9   :  { %v624_v50 = vrot.slane %v623_v45, 1 }
 0x1ea   :  { %v627_v44 = vrot.slane %v626_v43, 4 }
 0x1eb   :  { %v625_v53 = vadd.f32 %v624_v50, %v623_v45 }
 0x1ec   :  { %v628_v46 = vadd.f32 %v627_v44, %v626_v43 }
 0x1ee   :  { %v629_v49 = vrot.slane %v628_v46, 2 }
 0x1f0   :  { %v630_v51 = vadd.f32 %v629_v49, %v628_v46 }
 0x1f2   :  { %v631_v52 = vrot.slane %v630_v51, 1 }
 0x1f4   :  { %v632_v54 = vadd.f32 %v631_v52, %v630_v51 }
 0x1f6   :  { %v652_v55 = vsel %vm651_vm11, %v632_v54, %v625_v53 }
 0x1f7   :  { %1166 = vmatmul.mubr.f32.vlgmr.msra.gmra.mxu0 %v652_v55 }
 0x2b7   :  { %v720_v58 = vpop.f32.mrf.mxu0 }
 0x2b8   :  { %vm725_vm12 = vcmp.ge.f32.partialorder %v720_v58, 0.0  ;;  %v735_v59 = vmul.f32 %v733_v57, %v720_v58 }
 0x2b9   :  { %v1167_v60 = vpop.f32.mrf.mxu0 }
 0x2ba   :  { %v736_v61 = vsel %vm725_vm12, %v720_v58, %v735_v59 }
 0x2bb   :  { %1173 = vmatmul.mubr.msk.f32.vlgmr.msra.gmra.mxu1 %vm739_vm13, %v736_v61 }
 0x37b   :  { %v809_v62 = vpop.f32.mrf.mxu1 }
 0x37c   :  { %v907_v63 = vmul.f32 -1.442695, %v809_v62 }
 0x37d   :  { %v1174_v0 = vpop.f32.mrf.mxu1 }
 0x37e   :  { %1185 = vpow2.f32 %v907_v63 }
 0x38b   :  { %v1186_v1 = vpop.eup %1185 }
 0x38c   :  { %v816_v2 = vadd.f32 1.0, %v1186_v1 }
 0x38e   :  { %1187 = vrcp.f32 %v816_v2 }
 0x39b   :  { %v1188_v9 = vpop.eup %1187 }
 0x39c   :  { %v826_v10 = vrot.slane %v1188_v9, %v825_v8 }
 0x39e   :  { %v827_v12 = vcombine.high %v826_v10, %v826_v10  ;;  %v834_v13 = vrot.slane %v826_v10, %v825_v8 }
 0x3a0   :  { %v841_v14 = vrot.slane %v827_v12, %v825_v8  ;;  %v845_v15 = vrot.slane %v834_v13, %v844_v11 }
 0x3a2   :  { %v849_v16 = vrot.slane %v841_v14, %v844_v11  ;;  %v852_v17 = vmul.f32 %v845_v15, %v615_v26  ;;  %v853_v18 = vmul.f32 %v845_v15, %v616_v27 }
 0x3a4   :  { %v854_v19 = vmul.f32 %v849_v16, %v617_v38  ;;  %v855_v20 = vmul.f32 %v849_v16, %v618_v39  ;;  %v856_v21 = vadd.f32 %v852_v17, %v1342_v40  ;;  %v857_v22 = vadd.f32 %v853_v18, %v1347_v42 }
 0x3a6   :  { %v858_v24 = vadd.f32 %v854_v19, %v1353_v47  ;;  %v859_v25 = vadd.f32 %v855_v20, %v1358_v48  ;;  %vm861_vm14 = vcmp.ge.f32.partialorder %v856_v21, 0.0  ;;  %vm862_vm15 = vcmp.ge.f32.partialorder %v857_v22, 0.0 }
 0x3a7   :  { %v871_v26 = vmul.f32 %v908_v23, %v856_v21  ;;  %v872_v27 = vmul.f32 %v908_v23, %v857_v22 }
 0x3a8   :  { %vm863_vm0 = vcmp.ge.f32.partialorder %v858_v24, 0.0  ;;  %vm864_vm1 = vcmp.ge.f32.partialorder %v859_v25, 0.0  ;;  %v873_v28 = vmul.f32 %v908_v23, %v858_v24  ;;  %v874_v40 = vmul.f32 %v908_v23, %v859_v25 }
 0x3a9   :  { %v875_v29 = vsel %vm861_vm14, %v856_v21, %v871_v26  ;;  %v876_v42 = vsel %vm862_vm15, %v857_v22, %v872_v27 }
 0x3aa   :  { %v877_v30 = vsel %vm863_vm0, %v858_v24, %v873_v28  ;;  %v878_v31 = vsel %vm864_vm1, %v859_v25, %v874_v40  ;;  %879 = vst [vmem:[#allocation8] sm:$0xff] %v875_v29  ;;  %880 = vst [vmem:[#allocation8 + $0x8] sm:$0xff] %v876_v42 }
 0x3ab   :  { %881 = vst [vmem:[#allocation8 + $0x10] sm:$0xff] %v877_v30  ;;  %882 = vst [vmem:[#allocation8 + $0x18] sm:$0xff] %v878_v31 }
 0x3ac   :  { %1240 = shalt.err (!%p1237_p0)
}
 0x3ad   :  { %894 = dma.vmem_to_hbm [thread:$0]  %s889_s14, 512, %s1481_s11, [#allocation5], %s1256_s22, %s1256_s22, %s1257_s23  }
 0x3ae   :  { %1253 = dma.done.wait [#allocation5], 512  }
 0x3af   :  { %1254 = vsyncadd [#allocation5], 4294966784 }
 0x3b0   :  { %898 = vsyncpa [#allocation4], 1 }
 0x3b1   :  { %899 = vsyncpa [#allocation7], 1 }
 0x3b2   :  { %900 = vsyncpa [#allocation5], 1 }

</bundles_post_ra>
